<compile_context>
chip_gen: v7x
topology: tpu7x:2x2x1
jax: 0.10.0
libtpu: 0.0.40
codegen_flags: <defaults>
</compile_context>

<pallas_src>
import jax
import jax.numpy as jnp
from jax.experimental import pallas as pl
from jax.experimental.pallas import tpu as pltpu

HIDDEN_SIZE = 32
INPUT_SIZE = 1
NUM_LAYERS = 1


def reg_rnn_kernel(x_ref, h0_ref, w_ih_ref, w_hh_ref, b_rnn_ref,
                   w_out_ref, b_out_ref, y_ref, hT_ref, hist_ref):
    """One batch tile, whole sequence resident in VMEM.

    x_ref:    (T, Bt, 1)  time-major input tile
    h0_ref:   (Bt, H)     initial hidden-state tile
    w_ih_ref: (1, H)      flattened W_ih (input_size == 1)
    w_hh_ref: (H, H)      = W_hh^T  (so the recurrence is h @ w_hh)
    b_rnn_ref:(1, H)      = b_ih + b_hh
    w_out_ref:(1, H)      flattened Linear weight (out_features == 1)
    b_out_ref:(1, 1)      Linear bias
    y_ref:    (T, Bt)     per-step Linear outputs (time-major)
    hT_ref:   (Bt, H)     final hidden-state tile
    hist_ref: (T, Bt, H)  f32 scratch: hidden-state history for the output proj
    """
    T = x_ref.shape[0]

    # Loop-invariant parameter loads (each fits comfortably in vregs).
    w_ih = w_ih_ref[...].astype(jnp.float32)        # (1, H)
    b_rnn = b_rnn_ref[...].astype(jnp.float32)      # (1, H)
    w_hh = w_hh_ref[...].astype(jnp.float32)        # (H, H)

    # Serial recurrence.  pre_t does not depend on h, so it overlaps with the
    # MXU matmul; the history store is also off the chain; h is the fori carry
    # (no VMEM round-trip per step).
    def step(t, h):
        pre_t = x_ref[t].astype(jnp.float32) * w_ih + b_rnn          # (Bt, H)
        h_new = jnp.tanh(
            pre_t + jnp.dot(h, w_hh, preferred_element_type=jnp.float32))
        hist_ref[t] = h_new
        return h_new

    unroll = T if T <= 16 else 8   # full unroll only for small fixed T
    h_final = jax.lax.fori_loop(0, T, step,
                                h0_ref[...].astype(jnp.float32),
                                unroll=unroll)
    hT_ref[...] = h_final.astype(hT_ref.dtype)

    # Hoisted output Linear (out_features == 1): one broadcast multiply, one
    # lane reduction over H, one dense store of the whole (T, Bt) block.
    # TODO(synk): on v6e/v7x, hist could be stored bf16 (recurrence kept f32)
    #             to halve scratch, at ~1e-3 parity cost vs the f32 reference.
    y = jnp.sum(hist_ref[...] * w_out_ref[...].astype(jnp.float32), axis=-1)
    y = y + b_out_ref[...].astype(jnp.float32)
    y_ref[...] = y.astype(y_ref.dtype)                                # (T, Bt)


def reg_rnn_forward(x, h_state, params, *, batch_tile=None):
    """x: (B, T, 1) float32; h_state: (NUM_LAYERS, B, H) or None.

    Returns (y, h_state') with y: (B, T, 1), h_state': (NUM_LAYERS, B, H) —
    same semantics as the PyTorch module."""
    B, T, I = x.shape
    H = HIDDEN_SIZE
    assert I == INPUT_SIZE

    if h_state is None:
        h0 = jnp.zeros((B, H), dtype=x.dtype)
    else:
        h0 = h_state.reshape(B, H).astype(x.dtype)

    # Glue: flatten parameters into broadcast-ready layouts (in = out = 1).
    w_ih = params["w_ih"].reshape(1, H)                  # (H, 1) -> (1, H)
    w_hh_t = params["w_hh"].T                            # (H, H)
    b_rnn = (params["b_ih"] + params["b_hh"]).reshape(1, H)
    w_out = params["w_out"].reshape(1, H)                # (1, H)
    b_out = params["b_out"].reshape(1, 1)

    x_tm = jnp.transpose(x, (1, 0, 2))                   # (T, B, 1) time-major

    # Batch tile: full batch when small; otherwise a multiple of 128 so the
    # (T, Bt) y block is lane-dense and tiles shard across v7x TensorCores.
    if batch_tile is not None:
        Bt = batch_tile
    elif B > 128 and B % 128 == 0:
        Bt = 128
    else:
        Bt = B
    if Bt != B:
        assert B % Bt == 0 and Bt % 128 == 0, (
            "batch tile must divide B and be a multiple of 128")
    n_tiles = B // Bt

    # Explicit scoped-VMEM budget: one (T, Bt, H) scratch + double-buffered IO
    # blocks, with 2x headroom.  >= 32 MiB lifts v5e's 16 MiB scoped default;
    # clamped at v7x's 64 MiB physical VMEM.
    est = (T * Bt * H * 4                     # history scratch
           + 2 * 2 * T * Bt * 4               # x + y blocks, double-buffered
           + 2 * 2 * Bt * H * 4               # h0 + hT blocks, double-buffered
           + (H * H + 3 * H + 1) * 4)         # parameters
    vmem_limit = int(min(max(2 * est, 32 * 1024 * 1024), 64 * 1024 * 1024))

    grid_spec = pltpu.PrefetchScalarGridSpec(
        num_scalar_prefetch=0,
        grid=(n_tiles,),
        in_specs=[
            pl.BlockSpec((T, Bt, 1), lambda b: (0, b, 0)),   # x  (time-major)
            pl.BlockSpec((Bt, H), lambda b: (b, 0)),         # h0
            pl.BlockSpec((1, H), lambda b: (0, 0)),          # w_ih
            pl.BlockSpec((H, H), lambda b: (0, 0)),          # w_hh^T
            pl.BlockSpec((1, H), lambda b: (0, 0)),          # b_ih + b_hh
            pl.BlockSpec((1, H), lambda b: (0, 0)),          # w_out
            pl.BlockSpec((1, 1), lambda b: (0, 0)),          # b_out
        ],
        out_specs=(
            pl.BlockSpec((T, Bt), lambda b: (0, b)),         # y  (time-major)
            pl.BlockSpec((Bt, H), lambda b: (b, 0)),         # hT
        ),
        scratch_shapes=[
            pltpu.VMEM((T, Bt, H), jnp.float32),   # hidden-state history
        ],
    )

    y_tm, hT = pl.pallas_call(
        reg_rnn_kernel,
        out_shape=(
            jax.ShapeDtypeStruct((T, B), x.dtype),
            jax.ShapeDtypeStruct((B, H), x.dtype),
        ),
        grid_spec=grid_spec,
        compiler_params=pltpu.CompilerParams(
            dimension_semantics=("parallel",),
            vmem_limit_bytes=vmem_limit),
    )(x_tm, h0, w_ih, w_hh_t, b_rnn, w_out, b_out)

    y = jnp.transpose(y_tm)[:, :, None]                  # (B, T, 1) batch-first
    return y, hT.reshape(NUM_LAYERS, B, H)


def init_params(key):
    """Deterministic init mirroring PyTorch shapes; uniform(-1/sqrt(H), 1/sqrt(H))."""
    H, I = HIDDEN_SIZE, INPUT_SIZE
    bound = 1.0 / jnp.sqrt(jnp.float32(H))
    ks = jax.random.split(key, 6)
    u = lambda k, shape: jax.random.uniform(
        k, shape, jnp.float32, minval=-bound, maxval=bound)
    return {
        "w_ih": u(ks[0], (H, I)),     # nn.RNN weight_ih_l0
        "w_hh": u(ks[1], (H, H)),     # nn.RNN weight_hh_l0
        "b_ih": u(ks[2], (H,)),       # nn.RNN bias_ih_l0
        "b_hh": u(ks[3], (H,)),       # nn.RNN bias_hh_l0
        "w_out": u(ks[4], (1, H)),    # nn.Linear(32, 1) weight
        "b_out": u(ks[5], (1,)),      # nn.Linear(32, 1) bias
    }


def reg_rnn_reference(x, h_state, params):
    """Pure-JAX reference of the PyTorch forward, for verification."""
    B, T, _ = x.shape
    H = HIDDEN_SIZE
    h = jnp.zeros((B, H), x.dtype) if h_state is None else h_state.reshape(B, H)
    w_ih_t, w_hh_t = params["w_ih"].T, params["w_hh"].T
    b = params["b_ih"] + params["b_hh"]
    outs = []
    for t in range(T):
        h = jnp.tanh(x[:, t, :] @ w_ih_t + h @ w_hh_t + b)
        outs.append(h @ params["w_out"].T + params["b_out"])
    return jnp.stack(outs, axis=1), h.reshape(NUM_LAYERS, B, H)


if __name__ == "__main__":
    key = jax.random.PRNGKey(0)
    k_param, k_x = jax.random.split(key)

    B, T = 2, 8
    params = init_params(k_param)
    x = jax.random.normal(k_x, (B, T, INPUT_SIZE), dtype=jnp.float32)
    h_state = None  # PyTorch: None -> zeros initial hidden state

    y, hT = reg_rnn_forward(x, h_state, params)
    y = jax.block_until_ready(y)
    hT = jax.block_until_ready(hT)

    assert y.shape == (B, T, 1) and hT.shape == (NUM_LAYERS, B, HIDDEN_SIZE)

    y_ref, hT_ref = reg_rnn_reference(x, h_state, params)
    assert jnp.allclose(y, y_ref, atol=1e-5, rtol=1e-5)
    assert jnp.allclose(hT, hT_ref, atol=1e-5, rtol=1e-5)

    print("KERNEL_OK")
</pallas_src>

<mosaic_0001>
module attributes {stable_mosaic.version = 11 : i64} {
  func.func @reg_rnn_kernel(%arg0: i32, %arg1: memref<8x2x1xf32, #tpu.memory_space<vmem>>, %arg2: memref<2x32xf32, #tpu.memory_space<vmem>>, %arg3: memref<1x32xf32, #tpu.memory_space<vmem>>, %arg4: memref<32x32xf32, #tpu.memory_space<vmem>>, %arg5: memref<1x32xf32, #tpu.memory_space<vmem>>, %arg6: memref<1x32xf32, #tpu.memory_space<vmem>>, %arg7: memref<1x1xf32, #tpu.memory_space<vmem>>, %arg8: memref<8x2xf32, #tpu.memory_space<vmem>>, %arg9: memref<2x32xf32, #tpu.memory_space<vmem>>, %arg10: memref<8x2x32xf32, #tpu.memory_space<vmem>>) attributes {dimension_semantics = [#tpu.dimension_semantics<parallel>], iteration_bounds = array<i64: 1>, scalar_prefetch = 0 : i64, scratch_operands = 1 : i64, tpu.core_type = #tpu.core_type<tc>, window_params = [{transform_indices = @transform_0, window_bounds = array<i64: 8, 2, 1>}, {transform_indices = @transform_1, window_bounds = array<i64: 2, 32>}, {pipeline_mode = #tpu.pipeline_mode<synchronous>, transform_indices = @transform_2, window_bounds = array<i64: 1, 32>}, {pipeline_mode = #tpu.pipeline_mode<synchronous>, transform_indices = @transform_3, window_bounds = array<i64: 32, 32>}, {pipeline_mode = #tpu.pipeline_mode<synchronous>, transform_indices = @transform_4, window_bounds = array<i64: 1, 32>}, {pipeline_mode = #tpu.pipeline_mode<synchronous>, transform_indices = @transform_5, window_bounds = array<i64: 1, 32>}, {pipeline_mode = #tpu.pipeline_mode<synchronous>, transform_indices = @transform_6, window_bounds = array<i64: 1, 1>}, {transform_indices = @transform_7, window_bounds = array<i64: 8, 2>}, {transform_indices = @transform_8, window_bounds = array<i64: 2, 32>}]} {
    %c0 = arith.constant 0 : index
    %c0_0 = arith.constant 0 : index
    %0 = vector.load %arg3[%c0, %c0_0] : memref<1x32xf32, #tpu.memory_space<vmem>>, vector<1x32xf32>
    %c0_1 = arith.constant 0 : index
    %c0_2 = arith.constant 0 : index
    %1 = vector.load %arg5[%c0_1, %c0_2] : memref<1x32xf32, #tpu.memory_space<vmem>>, vector<1x32xf32>
    %c0_3 = arith.constant 0 : index
    %c0_4 = arith.constant 0 : index
    %2 = vector.load %arg4[%c0_3, %c0_4] : memref<32x32xf32, #tpu.memory_space<vmem>>, vector<32x32xf32>
    %c0_5 = arith.constant 0 : index
    %c0_6 = arith.constant 0 : index
    %3 = vector.load %arg2[%c0_5, %c0_6] : memref<2x32xf32, #tpu.memory_space<vmem>>, vector<2x32xf32>
    %c0_i32 = arith.constant 0 : i32
    %4 = arith.index_cast %c0_i32 : i32 to index
    %c0_7 = arith.constant 0 : index
    %c0_8 = arith.constant 0 : index
    %5 = vector.load %arg1[%4, %c0_7, %c0_8] : memref<8x2x1xf32, #tpu.memory_space<vmem>>, vector<1x2x1xf32>
    %6 = vector.shape_cast %5 : vector<1x2x1xf32> to vector<2x1xf32>
    %7 = vector.broadcast %6 : vector<2x1xf32> to vector<2x32xf32>
    %8 = vector.broadcast %0 : vector<1x32xf32> to vector<2x32xf32>
    %9 = arith.mulf %7, %8 : vector<2x32xf32>
    %10 = vector.broadcast %1 : vector<1x32xf32> to vector<2x32xf32>
    %11 = arith.addf %9, %10 : vector<2x32xf32>
    %cst = arith.constant dense<0.000000e+00> : vector<2x32xf32>
    %12 = tpu.matmul %3, %2, %cst {dimension_numbers = #tpu.dot_dimension_numbers<[1], [0], [0], [1], [0, 0, 1, 1], [], []>} : vector<2x32xf32>, vector<32x32xf32>, vector<2x32xf32> -> vector<2x32xf32>
    %13 = arith.addf %11, %12 : vector<2x32xf32>
    %14 = math.tanh %13 : vector<2x32xf32>
    %15 = arith.index_cast %c0_i32 : i32 to index
    %c0_9 = arith.constant 0 : index
    %c0_10 = arith.constant 0 : index
    %16 = vector.load %arg10[%15, %c0_9, %c0_10] : memref<8x2x32xf32, #tpu.memory_space<vmem>>, vector<1x2x32xf32>
    %17 = vector.shape_cast %16 : vector<1x2x32xf32> to vector<2x32xf32>
    %18 = vector.shape_cast %14 : vector<2x32xf32> to vector<1x2x32xf32>
    tpu.vector_store %arg10[%15, %c0_9, %c0_10], %18 {strides = array<i32>} : memref<8x2x32xf32, #tpu.memory_space<vmem>>, vector<1x2x32xf32>,
    %c1_i32 = arith.constant 1 : i32
    %19 = arith.index_cast %c1_i32 : i32 to index
    %c0_11 = arith.constant 0 : index
    %c0_12 = arith.constant 0 : index
    %20 = vector.load %arg1[%19, %c0_11, %c0_12] : memref<8x2x1xf32, #tpu.memory_space<vmem>>, vector<1x2x1xf32>
    %21 = vector.shape_cast %20 : vector<1x2x1xf32> to vector<2x1xf32>
    %22 = vector.broadcast %21 : vector<2x1xf32> to vector<2x32xf32>
    %23 = vector.broadcast %0 : vector<1x32xf32> to vector<2x32xf32>
    %24 = arith.mulf %22, %23 : vector<2x32xf32>
    %25 = vector.broadcast %1 : vector<1x32xf32> to vector<2x32xf32>
    %26 = arith.addf %24, %25 : vector<2x32xf32>
    %cst_13 = arith.constant dense<0.000000e+00> : vector<2x32xf32>
    %27 = tpu.matmul %14, %2, %cst_13 {dimension_numbers = #tpu.dot_dimension_numbers<[1], [0], [0], [1], [0, 0, 1, 1], [], []>} : vector<2x32xf32>, vector<32x32xf32>, vector<2x32xf32> -> vector<2x32xf32>
    %28 = arith.addf %26, %27 : vector<2x32xf32>
    %29 = math.tanh %28 : vector<2x32xf32>
    %30 = arith.index_cast %c1_i32 : i32 to index
    %c0_14 = arith.constant 0 : index
    %c0_15 = arith.constant 0 : index
    %31 = vector.load %arg10[%30, %c0_14, %c0_15] : memref<8x2x32xf32, #tpu.memory_space<vmem>>, vector<1x2x32xf32>
    %32 = vector.shape_cast %31 : vector<1x2x32xf32> to vector<2x32xf32>
    %33 = vector.shape_cast %29 : vector<2x32xf32> to vector<1x2x32xf32>
    tpu.vector_store %arg10[%30, %c0_14, %c0_15], %33 {strides = array<i32>} : memref<8x2x32xf32, #tpu.memory_space<vmem>>, vector<1x2x32xf32>,
    %c2_i32 = arith.constant 2 : i32
    %34 = arith.index_cast %c2_i32 : i32 to index
    %c0_16 = arith.constant 0 : index
    %c0_17 = arith.constant 0 : index
    %35 = vector.load %arg1[%34, %c0_16, %c0_17] : memref<8x2x1xf32, #tpu.memory_space<vmem>>, vector<1x2x1xf32>
    %36 = vector.shape_cast %35 : vector<1x2x1xf32> to vector<2x1xf32>
    %37 = vector.broadcast %36 : vector<2x1xf32> to vector<2x32xf32>
    %38 = vector.broadcast %0 : vector<1x32xf32> to vector<2x32xf32>
    %39 = arith.mulf %37, %38 : vector<2x32xf32>
    %40 = vector.broadcast %1 : vector<1x32xf32> to vector<2x32xf32>
    %41 = arith.addf %39, %40 : vector<2x32xf32>
    %cst_18 = arith.constant dense<0.000000e+00> : vector<2x32xf32>
    %42 = tpu.matmul %29, %2, %cst_18 {dimension_numbers = #tpu.dot_dimension_numbers<[1], [0], [0], [1], [0, 0, 1, 1], [], []>} : vector<2x32xf32>, vector<32x32xf32>, vector<2x32xf32> -> vector<2x32xf32>
    %43 = arith.addf %41, %42 : vector<2x32xf32>
    %44 = math.tanh %43 : vector<2x32xf32>
    %45 = arith.index_cast %c2_i32 : i32 to index
    %c0_19 = arith.constant 0 : index
    %c0_20 = arith.constant 0 : index
    %46 = vector.load %arg10[%45, %c0_19, %c0_20] : memref<8x2x32xf32, #tpu.memory_space<vmem>>, vector<1x2x32xf32>
    %47 = vector.shape_cast %46 : vector<1x2x32xf32> to vector<2x32xf32>
    %48 = vector.shape_cast %44 : vector<2x32xf32> to vector<1x2x32xf32>
    tpu.vector_store %arg10[%45, %c0_19, %c0_20], %48 {strides = array<i32>} : memref<8x2x32xf32, #tpu.memory_space<vmem>>, vector<1x2x32xf32>,
    %c3_i32 = arith.constant 3 : i32
    %49 = arith.index_cast %c3_i32 : i32 to index
    %c0_21 = arith.constant 0 : index
    %c0_22 = arith.constant 0 : index
    %50 = vector.load %arg1[%49, %c0_21, %c0_22] : memref<8x2x1xf32, #tpu.memory_space<vmem>>, vector<1x2x1xf32>
    %51 = vector.shape_cast %50 : vector<1x2x1xf32> to vector<2x1xf32>
    %52 = vector.broadcast %51 : vector<2x1xf32> to vector<2x32xf32>
    %53 = vector.broadcast %0 : vector<1x32xf32> to vector<2x32xf32>
    %54 = arith.mulf %52, %53 : vector<2x32xf32>
    %55 = vector.broadcast %1 : vector<1x32xf32> to vector<2x32xf32>
    %56 = arith.addf %54, %55 : vector<2x32xf32>
    %cst_23 = arith.constant dense<0.000000e+00> : vector<2x32xf32>
    %57 = tpu.matmul %44, %2, %cst_23 {dimension_numbers = #tpu.dot_dimension_numbers<[1], [0], [0], [1], [0, 0, 1, 1], [], []>} : vector<2x32xf32>, vector<32x32xf32>, vector<2x32xf32> -> vector<2x32xf32>
    %58 = arith.addf %56, %57 : vector<2x32xf32>
    %59 = math.tanh %58 : vector<2x32xf32>
    %60 = arith.index_cast %c3_i32 : i32 to index
    %c0_24 = arith.constant 0 : index
    %c0_25 = arith.constant 0 : index
    %61 = vector.load %arg10[%60, %c0_24, %c0_25] : memref<8x2x32xf32, #tpu.memory_space<vmem>>, vector<1x2x32xf32>
    %62 = vector.shape_cast %61 : vector<1x2x32xf32> to vector<2x32xf32>
    %63 = vector.shape_cast %59 : vector<2x32xf32> to vector<1x2x32xf32>
    tpu.vector_store %arg10[%60, %c0_24, %c0_25], %63 {strides = array<i32>} : memref<8x2x32xf32, #tpu.memory_space<vmem>>, vector<1x2x32xf32>,
    %c4_i32 = arith.constant 4 : i32
    %64 = arith.index_cast %c4_i32 : i32 to index
    %c0_26 = arith.constant 0 : index
    %c0_27 = arith.constant 0 : index
    %65 = vector.load %arg1[%64, %c0_26, %c0_27] : memref<8x2x1xf32, #tpu.memory_space<vmem>>, vector<1x2x1xf32>
    %66 = vector.shape_cast %65 : vector<1x2x1xf32> to vector<2x1xf32>
    %67 = vector.broadcast %66 : vector<2x1xf32> to vector<2x32xf32>
    %68 = vector.broadcast %0 : vector<1x32xf32> to vector<2x32xf32>
    %69 = arith.mulf %67, %68 : vector<2x32xf32>
    %70 = vector.broadcast %1 : vector<1x32xf32> to vector<2x32xf32>
    %71 = arith.addf %69, %70 : vector<2x32xf32>
    %cst_28 = arith.constant dense<0.000000e+00> : vector<2x32xf32>
    %72 = tpu.matmul %59, %2, %cst_28 {dimension_numbers = #tpu.dot_dimension_numbers<[1], [0], [0], [1], [0, 0, 1, 1], [], []>} : vector<2x32xf32>, vector<32x32xf32>, vector<2x32xf32> -> vector<2x32xf32>
    %73 = arith.addf %71, %72 : vector<2x32xf32>
    %74 = math.tanh %73 : vector<2x32xf32>
    %75 = arith.index_cast %c4_i32 : i32 to index
    %c0_29 = arith.constant 0 : index
    %c0_30 = arith.constant 0 : index
    %76 = vector.load %arg10[%75, %c0_29, %c0_30] : memref<8x2x32xf32, #tpu.memory_space<vmem>>, vector<1x2x32xf32>
    %77 = vector.shape_cast %76 : vector<1x2x32xf32> to vector<2x32xf32>
    %78 = vector.shape_cast %74 : vector<2x32xf32> to vector<1x2x32xf32>
    tpu.vector_store %arg10[%75, %c0_29, %c0_30], %78 {strides = array<i32>} : memref<8x2x32xf32, #tpu.memory_space<vmem>>, vector<1x2x32xf32>,
    %c5_i32 = arith.constant 5 : i32
    %79 = arith.index_cast %c5_i32 : i32 to index
    %c0_31 = arith.constant 0 : index
    %c0_32 = arith.constant 0 : index
    %80 = vector.load %arg1[%79, %c0_31, %c0_32] : memref<8x2x1xf32, #tpu.memory_space<vmem>>, vector<1x2x1xf32>
    %81 = vector.shape_cast %80 : vector<1x2x1xf32> to vector<2x1xf32>
    %82 = vector.broadcast %81 : vector<2x1xf32> to vector<2x32xf32>
    %83 = vector.broadcast %0 : vector<1x32xf32> to vector<2x32xf32>
    %84 = arith.mulf %82, %83 : vector<2x32xf32>
    %85 = vector.broadcast %1 : vector<1x32xf32> to vector<2x32xf32>
    %86 = arith.addf %84, %85 : vector<2x32xf32>
    %cst_33 = arith.constant dense<0.000000e+00> : vector<2x32xf32>
    %87 = tpu.matmul %74, %2, %cst_33 {dimension_numbers = #tpu.dot_dimension_numbers<[1], [0], [0], [1], [0, 0, 1, 1], [], []>} : vector<2x32xf32>, vector<32x32xf32>, vector<2x32xf32> -> vector<2x32xf32>
    %88 = arith.addf %86, %87 : vector<2x32xf32>
    %89 = math.tanh %88 : vector<2x32xf32>
    %90 = arith.index_cast %c5_i32 : i32 to index
    %c0_34 = arith.constant 0 : index
    %c0_35 = arith.constant 0 : index
    %91 = vector.load %arg10[%90, %c0_34, %c0_35] : memref<8x2x32xf32, #tpu.memory_space<vmem>>, vector<1x2x32xf32>
    %92 = vector.shape_cast %91 : vector<1x2x32xf32> to vector<2x32xf32>
    %93 = vector.shape_cast %89 : vector<2x32xf32> to vector<1x2x32xf32>
    tpu.vector_store %arg10[%90, %c0_34, %c0_35], %93 {strides = array<i32>} : memref<8x2x32xf32, #tpu.memory_space<vmem>>, vector<1x2x32xf32>,
    %c6_i32 = arith.constant 6 : i32
    %94 = arith.index_cast %c6_i32 : i32 to index
    %c0_36 = arith.constant 0 : index
    %c0_37 = arith.constant 0 : index
    %95 = vector.load %arg1[%94, %c0_36, %c0_37] : memref<8x2x1xf32, #tpu.memory_space<vmem>>, vector<1x2x1xf32>
    %96 = vector.shape_cast %95 : vector<1x2x1xf32> to vector<2x1xf32>
    %97 = vector.broadcast %96 : vector<2x1xf32> to vector<2x32xf32>
    %98 = vector.broadcast %0 : vector<1x32xf32> to vector<2x32xf32>
    %99 = arith.mulf %97, %98 : vector<2x32xf32>
    %100 = vector.broadcast %1 : vector<1x32xf32> to vector<2x32xf32>
    %101 = arith.addf %99, %100 : vector<2x32xf32>
    %cst_38 = arith.constant dense<0.000000e+00> : vector<2x32xf32>
    %102 = tpu.matmul %89, %2, %cst_38 {dimension_numbers = #tpu.dot_dimension_numbers<[1], [0], [0], [1], [0, 0, 1, 1], [], []>} : vector<2x32xf32>, vector<32x32xf32>, vector<2x32xf32> -> vector<2x32xf32>
    %103 = arith.addf %101, %102 : vector<2x32xf32>
    %104 = math.tanh %103 : vector<2x32xf32>
    %105 = arith.index_cast %c6_i32 : i32 to index
    %c0_39 = arith.constant 0 : index
    %c0_40 = arith.constant 0 : index
    %106 = vector.load %arg10[%105, %c0_39, %c0_40] : memref<8x2x32xf32, #tpu.memory_space<vmem>>, vector<1x2x32xf32>
    %107 = vector.shape_cast %106 : vector<1x2x32xf32> to vector<2x32xf32>
    %108 = vector.shape_cast %104 : vector<2x32xf32> to vector<1x2x32xf32>
    tpu.vector_store %arg10[%105, %c0_39, %c0_40], %108 {strides = array<i32>} : memref<8x2x32xf32, #tpu.memory_space<vmem>>, vector<1x2x32xf32>,
    %c7_i32 = arith.constant 7 : i32
    %109 = arith.index_cast %c7_i32 : i32 to index
    %c0_41 = arith.constant 0 : index
    %c0_42 = arith.constant 0 : index
    %110 = vector.load %arg1[%109, %c0_41, %c0_42] : memref<8x2x1xf32, #tpu.memory_space<vmem>>, vector<1x2x1xf32>
    %111 = vector.shape_cast %110 : vector<1x2x1xf32> to vector<2x1xf32>
    %112 = vector.broadcast %111 : vector<2x1xf32> to vector<2x32xf32>
    %113 = vector.broadcast %0 : vector<1x32xf32> to vector<2x32xf32>
    %114 = arith.mulf %112, %113 : vector<2x32xf32>
    %115 = vector.broadcast %1 : vector<1x32xf32> to vector<2x32xf32>
    %116 = arith.addf %114, %115 : vector<2x32xf32>
    %cst_43 = arith.constant dense<0.000000e+00> : vector<2x32xf32>
    %117 = tpu.matmul %104, %2, %cst_43 {dimension_numbers = #tpu.dot_dimension_numbers<[1], [0], [0], [1], [0, 0, 1, 1], [], []>} : vector<2x32xf32>, vector<32x32xf32>, vector<2x32xf32> -> vector<2x32xf32>
    %118 = arith.addf %116, %117 : vector<2x32xf32>
    %119 = math.tanh %118 : vector<2x32xf32>
    %120 = arith.index_cast %c7_i32 : i32 to index
    %c0_44 = arith.constant 0 : index
    %c0_45 = arith.constant 0 : index
    %121 = vector.load %arg10[%120, %c0_44, %c0_45] : memref<8x2x32xf32, #tpu.memory_space<vmem>>, vector<1x2x32xf32>
    %122 = vector.shape_cast %121 : vector<1x2x32xf32> to vector<2x32xf32>
    %123 = vector.shape_cast %119 : vector<2x32xf32> to vector<1x2x32xf32>
    tpu.vector_store %arg10[%120, %c0_44, %c0_45], %123 {strides = array<i32>} : memref<8x2x32xf32, #tpu.memory_space<vmem>>, vector<1x2x32xf32>,
    %c8_i32 = arith.constant 8 : i32
    %c0_46 = arith.constant 0 : index
    %c0_47 = arith.constant 0 : index
    %124 = vector.load %arg9[%c0_46, %c0_47] : memref<2x32xf32, #tpu.memory_space<vmem>>, vector<2x32xf32>
    tpu.vector_store %arg9[%c0_46, %c0_47], %119 {strides = array<i32>} : memref<2x32xf32, #tpu.memory_space<vmem>>, vector<2x32xf32>,
    %c0_48 = arith.constant 0 : index
    %c0_49 = arith.constant 0 : index
    %c0_50 = arith.constant 0 : index
    %125 = vector.load %arg10[%c0_48, %c0_49, %c0_50] : memref<8x2x32xf32, #tpu.memory_space<vmem>>, vector<8x2x32xf32>
    %c0_51 = arith.constant 0 : index
    %c0_52 = arith.constant 0 : index
    %126 = vector.load %arg6[%c0_51, %c0_52] : memref<1x32xf32, #tpu.memory_space<vmem>>, vector<1x32xf32>
    %127 = vector.shape_cast %126 : vector<1x32xf32> to vector<1x1x32xf32>
    %128 = vector.broadcast %127 : vector<1x1x32xf32> to vector<8x2x32xf32>
    %129 = arith.mulf %125, %128 : vector<8x2x32xf32>
    %cst_53 = arith.constant dense<0.000000e+00> : vector<8x2xf32>
    %130 = vector.multi_reduction <add>, %129, %cst_53 [2] : vector<8x2x32xf32> to vector<8x2xf32>
    %c0_54 = arith.constant 0 : index
    %c0_55 = arith.constant 0 : index
    %131 = vector.load %arg7[%c0_54, %c0_55] : memref<1x1xf32, #tpu.memory_space<vmem>>, vector<1x1xf32>
    %132 = vector.broadcast %131 : vector<1x1xf32> to vector<8x2xf32>
    %133 = arith.addf %130, %132 : vector<8x2xf32>
    %c0_56 = arith.constant 0 : index
    %c0_57 = arith.constant 0 : index
    %134 = vector.load %arg8[%c0_56, %c0_57] : memref<8x2xf32, #tpu.memory_space<vmem>>, vector<8x2xf32>
    tpu.vector_store %arg8[%c0_56, %c0_57], %133 {strides = array<i32>} : memref<8x2xf32, #tpu.memory_space<vmem>>, vector<8x2xf32>,
    return
  }
  func.func @transform_0(%arg0: i32) -> (i32, i32, i32) {
    %c0_i32 = arith.constant 0 : i32
    %c0_i32_0 = arith.constant 0 : i32
    %c0_i32_1 = arith.constant 0 : i32
    return %c0_i32, %arg0, %c0_i32_0 : i32, i32, i32
  }
  func.func @transform_1(%arg0: i32) -> (i32, i32) {
    %c0_i32 = arith.constant 0 : i32
    %c0_i32_0 = arith.constant 0 : i32
    return %arg0, %c0_i32 : i32, i32
  }
  func.func @transform_2(%arg0: i32) -> (i32, i32) {
    %c0_i32 = arith.constant 0 : i32
    %c0_i32_0 = arith.constant 0 : i32
    %c0_i32_1 = arith.constant 0 : i32
    return %c0_i32, %c0_i32_0 : i32, i32
  }
  func.func @transform_3(%arg0: i32) -> (i32, i32) {
    %c0_i32 = arith.constant 0 : i32
    %c0_i32_0 = arith.constant 0 : i32
    %c0_i32_1 = arith.constant 0 : i32
    return %c0_i32, %c0_i32_0 : i32, i32
  }
  func.func @transform_4(%arg0: i32) -> (i32, i32) {
    %c0_i32 = arith.constant 0 : i32
    %c0_i32_0 = arith.constant 0 : i32
    %c0_i32_1 = arith.constant 0 : i32
    return %c0_i32, %c0_i32_0 : i32, i32
  }
  func.func @transform_5(%arg0: i32) -> (i32, i32) {
    %c0_i32 = arith.constant 0 : i32
    %c0_i32_0 = arith.constant 0 : i32
    %c0_i32_1 = arith.constant 0 : i32
    return %c0_i32, %c0_i32_0 : i32, i32
  }
  func.func @transform_6(%arg0: i32) -> (i32, i32) {
    %c0_i32 = arith.constant 0 : i32
    %c0_i32_0 = arith.constant 0 : i32
    %c0_i32_1 = arith.constant 0 : i32
    return %c0_i32, %c0_i32_0 : i32, i32
  }
  func.func @transform_7(%arg0: i32) -> (i32, i32) {
    %c0_i32 = arith.constant 0 : i32
    %c0_i32_0 = arith.constant 0 : i32
    return %c0_i32, %arg0 : i32, i32
  }
  func.func @transform_8(%arg0: i32) -> (i32, i32) {
    %c0_i32 = arith.constant 0 : i32
    %c0_i32_0 = arith.constant 0 : i32
    return %arg0, %c0_i32 : i32, i32
  }
}

</mosaic_0001>

<bundles_post_ra>
// kernel: tpu_custom_call.1
= control target key start
LH: loop header
LB: loop body
LE: loop exit
PB: predicated region body
PF: predicated region fallthrough
CT: control target
= control target key end

     0   :  { %s1394_s0 = inlined_call_operand.vmem [shape: f32[8,2,1], index: 0, kind: input, shape index: {}]   ;;  %s1395_s1 = inlined_call_operand.hbm [shape: f32[2,32], index: 1, kind: input, shape index: {}]   ;;  %s1396_s2 = inlined_call_operand.vmem [shape: f32[1,32], index: 2, kind: input, shape index: {}]   ;;  %s1397_s3 = inlined_call_operand.vmem [shape: f32[32,32], index: 3, kind: input, shape index: {}]   ;;  %s1398_s4 = inlined_call_operand.vmem [shape: f32[1,32], index: 4, kind: input, shape index: {}]   ;;  %s1399_s5 = inlined_call_operand.vmem [shape: f32[1,32], index: 5, kind: input, shape index: {}]   ;;  %s1400_s6 = inlined_call_operand.<no memory space> [shape: f32[1,1], index: 6, kind: input, shape index: {}]   ;;  %s1401_s7 = inlined_call_operand.vmem [shape: f32[8,2], index: 7, kind: output, shape index: {0}]   ;;  %s1402_s8 = inlined_call_operand.hbm [shape: f32[2,32], index: 8, kind: output, shape index: {1}]  }
   0x1   :  { %v14_v0 = vstv %s1400_s6 }
   0x2   :  { %15 = vst [vmem:[#allocation3] sm:$0x1] %v14_v0 }
   0x3   :  { %16 = vsyncpa [#allocation5], 0 }
   0x4   :  { %17 = vsyncpa [#allocation6], 0  ;;  %s1161_s29 = smov [#allocation4]   ;;  %s1113_s11 = scalar_lea.hbm %s1395_s1, 32 }
   0x5   :  { %s26_s30 = sshll.u32 %s1161_s29, 4  ;;  %p1114_p0 = scmp.ne.s32.totalorder %s1395_s1, %s1113_s11  ;;  %s27_s30 = int_to_ptr.vmem [resolvable:$true] %s26_s30 }
   0x6   :  { %p1117_p1 = scmp.lt.u32.totalorder %s1113_s11, %s1395_s1 }
   0x8   :  { %p1119_p2 = pnand %p1117_p1, %p1114_p0 }
   0xa   :  { %1122 = shalt.err (!%p1119_p2)
}
   0xb   :  { %s1123_s6 = scalar_lea.vmem %s27_s30, 32  ;;  %p1128_p4 = scmp.lt.s32.totalorder %s27_s30, %s27_s30 }
   0xc   :  { %p1124_p3 = scmp.ne.s32.totalorder %s27_s30, %s1123_s6  ;;  %p1129_p5 = scmp.lt.s32.totalorder %s1123_s6, %s1123_s6 }
   0xe   :  { %p1130_p6 = por %p1129_p5, %p1128_p4 }
  0x10   :  { %p1131_p7 = pnand %p1130_p6, %p1124_p3 }
  0x12   :  { %1134 = shalt.err (!%p1131_p7)
}
  0x13   :  { %29 = dma.hbm_to_vmem [thread:$0]  %s1395_s1, 32, %s27_s30, [#allocation5]  }
  0x14   :  { %1157 = dma.done.wait [#allocation5], 32  }
  0x15   :  { %1158 = vsyncadd [#allocation5], 4294967264  ;;  %v1162_v1 = vmov 0.0|0.0   ;;  %vm1163_vm0 = vmmov 0   ;;  %v1164_v2 = vmov 0.0   ;;  %v1165_v3 = vmov 0  }
  0x16   :  { %1041 = vmatprep.subr.bf16.mxu0 %v1162_v1  ;;  %961 = vmatprep.mubr.msk.f32.mxu0 %vm1163_vm0, %v1164_v2  ;;  %v45_v4 = vld [vmem:[%s1397_s3] sm:$0xff]  ;;  %v46_v5 = vld [vmem:[%s1397_s3 + $0x8] sm:$0xff]  ;;  %v47_v6 = vld [vmem:[%s1397_s3 + $0x10] sm:$0xff]  ;;  %vm70_vm1 = vcmask 261120   ;;  %vm146_vm2 = vcmask 254976  }
  0x17   :  { %1095 = vset.pattern.permute.xlu0 %v1165_v3  ;;  %1047 = vmatprep.subr.bf16.mxu1 %v1162_v1  ;;  %v1242_v7 = vpack.c.bf16 %v46_v5, %v45_v4  ;;  %v48_v8 = vld [vmem:[%s1397_s3 + $0x18] sm:$0xff]  ;;  %v50_v9 = vld [vmem:[%s1394_s0] sm:$0x3]  ;;  %v897_v11 = vld [vmem:[%s1394_s0 + $0x2] sm:$0x3] }
  0x18   :  { %972 = vmatprep.mubr.msk.f32.mxu1 %vm1163_vm0, %v1164_v2  ;;  %1096 = vset.pattern.permute.xlu1 %v1165_v3  ;;  %v1251_v10 = vpack.c.bf16 %v48_v8, %v47_v6  ;;  %v49_v12 = vld [vmem:[#allocation4] sm:$0x3]  ;;  %v903_v13 = vld [vmem:[%s1394_s0 + $0x8] sm:$0x3]  ;;  %v907_v14 = vld [vmem:[%s1394_s0 + $0xc] sm:$0x3] }
  0x19   :  { %53 = vperm.xlu0 %1095, %v50_v9   ;;  %1043 = vmatpush3.bf16.msra.mxu0 %v1242_v7  ;;  %v1279_v15 = vld [vmem:[%s1396_s2] ss:$0 sm:$0xff]  ;;  %v899_v28 = vld [vmem:[%s1394_s0 + $0x4] sm:$0x3]  ;;  %v901_v29 = vld [vmem:[%s1394_s0 + $0x6] sm:$0x3] }
  0x1a   :  { %1049 = vmatpush3.bf16.msra.mxu1 %v1242_v7  ;;  %1044 = vmatprep.subr.bf16.mxu0 %v1162_v1  ;;  %v1285_v18 = vld [vmem:[%s1398_s4] ss:$0 sm:$0xff]  ;;  %v905_v30 = vld [vmem:[%s1394_s0 + $0xa] sm:$0x3]  ;;  %v909_v31 = vld [vmem:[%s1394_s0 + $0xe] sm:$0x3] }
  0x1b   :  { %1050 = vmatprep.subr.bf16.mxu1 %v1162_v1  ;;  %v1297_v24 = vld [vmem:[%s1399_s5] ss:$0 sm:$0xff]  ;;  %238 = vperm.xlu1 %1096, %v899_v28   ;;  %s1166_s0 = smov [#allocation7]  }
  0x1c   :  { %s883_s19 = sshll.u32 %s1166_s0, 4  ;;  %s884_s19 = int_to_ptr.vmem [resolvable:$true] %s883_s19 }
  0x1d   :  { %152 = vperm.xlu0 %1095, %v897_v11   ;;  %1046 = vmatpush3.bf16.msra.mxu0 %v1251_v10  ;;  %s1135_s20 = scalar_lea.vmem %s884_s19, 32  ;;  %p1140_p9 = scmp.lt.s32.totalorder %s884_s19, %s884_s19 }
  0x1e   :  { %1052 = vmatpush3.bf16.msra.mxu1 %v1251_v10  ;;  %1053 = vmatprep.subr.bf16.mxu0 %v1162_v1  ;;  %p1136_p8 = scmp.ne.s32.totalorder %s884_s19, %s1135_s20  ;;  %p1141_p10 = scmp.lt.s32.totalorder %s1135_s20, %s1135_s20 }
  0x1f   :  { %1059 = vmatprep.subr.bf16.mxu1 %v1162_v1  ;;  %324 = vperm.xlu1 %1096, %v901_v29  }
  0x20   :  { %962 = vmatmul.mubr.msk.f32.vlgmr.msra.gmra.mrb[0].mxu0 %vm70_vm1, %v49_v12  ;;  %p1142_p11 = por %p1141_p10, %p1140_p9 }
  0x21   :  { %410 = vperm.xlu0 %1095, %v903_v13   ;;  %1055 = vmatpush3.bf16.msra.mxu0 %v1242_v7 }
  0x22   :  { %983 = vmatprep.mubr.msk.f32.mxu0 %vm1163_vm0, %v1164_v2  ;;  %1056 = vmatprep.subr.bf16.mxu0 %v1162_v1  ;;  %p1143_p12 = pnand %p1142_p11, %p1136_p8 }
  0x23   :  { %496 = vperm.xlu1 %1096, %v905_v30  }
  0x25   :  { %582 = vperm.xlu0 %1095, %v907_v14   ;;  %1058 = vmatpush3.bf16.msra.mxu0 %v1251_v10 }
  0x26   :  { %1065 = vmatprep.subr.bf16.mxu0 %v1162_v1 }
  0x27   :  { %668 = vperm.xlu1 %1096, %v909_v31   ;;  %v912_v31 = vld [vmem:[#allocation3] ss:$0 sm:$0xff] }
  0x98   :  { %v54_v16 = vpop.permute.xlu0 %53 }
  0x99   :  { %v62_v17 = vmul.f32 %v1279_v15, %v54_v16 }
  0x9a   :  { %v239_v42 = vpop.permute.xlu1 %238 }
  0x9b   :  { %v69_v19 = vadd.f32 %v1285_v18, %v62_v17  ;;  %v241_v43 = vmul.f32 %v1279_v15, %v239_v42 }
  0x9c   :  { %v153_v32 = vpop.permute.xlu0 %152 }
  0x9d   :  { %v155_v33 = vmul.f32 %v1279_v15, %v153_v32  ;;  %v242_v44 = vadd.f32 %v1285_v18, %v241_v43 }
  0x9e   :  { %v325_v52 = vpop.permute.xlu1 %324 }
  0x9f   :  { %v156_v34 = vadd.f32 %v1285_v18, %v155_v33  ;;  %v327_v53 = vmul.f32 %v1279_v15, %v325_v52 }
  0xa0   :  { %v411_v62 = vpop.permute.xlu0 %410 }
  0xa1   :  { %v328_v54 = vadd.f32 %v1285_v18, %v327_v53  ;;  %v413_v63 = vmul.f32 %v1279_v15, %v411_v62 }
  0xa2   :  { %v497_v12 = vpop.permute.xlu1 %496 }
  0xa3   :  { %v414_v0 = vadd.f32 %v1285_v18, %v413_v63  ;;  %v499_v13 = vmul.f32 %v1279_v15, %v497_v12 }
  0xa5   :  { %v500_v14 = vadd.f32 %v1285_v18, %v499_v13 }
  0xa6   :  { %v669_v32 = vpop.permute.xlu1 %668 }
  0xa7   :  { %v671_v33 = vmul.f32 %v1279_v15, %v669_v32 }
  0xf3   :  { %v140_v20 = vpop.f32.mrb[0].mxu0 }
  0xf4   :  { %v144_v21 = vadd.f32 %v140_v20, %v69_v19  ;;  %v963_v22 = vpop.f32.mrb[1].mxu0  ;;  %v583_v20 = vpop.permute.xlu0 %582 }
  0xf6   :  { %1097 = vtanh.f32 %v144_v21  ;;  %v585_v21 = vmul.f32 %v1279_v15, %v583_v20 }
  0xf8   :  { %v586_v22 = vadd.f32 %v1285_v18, %v585_v21 }
 0x100   :  { %v1098_v23 = vpop.eup %1097 }
 0x101   :  { %147 = vst.msk [vmem:[#allocation2] sm:$0x3] %vm146_vm2, %v1098_v23  ;;  %973 = vmatmul.mubr.msk.f32.vlgmr.msra.gmra.mrb[0].mxu1 %vm70_vm1, %v1098_v23 }
 0x102   :  { %1061 = vmatpush3.bf16.msra.mxu1 %v1242_v7  ;;  %994 = vmatprep.mubr.msk.f32.mxu1 %vm1163_vm0, %v1164_v2 }
 0x103   :  { %1062 = vmatprep.subr.bf16.mxu1 %v1162_v1 }
 0x106   :  { %1064 = vmatpush3.bf16.msra.mxu1 %v1251_v10 }
 0x107   :  { %1071 = vmatprep.subr.bf16.mxu1 %v1162_v1 }
 0x108   :  { %v751_v25 = vld [vmem:[#allocation2] sm:$0x3] }
 0x109   :  { %v766_v26 = vmul.f32 %v1297_v24, %v751_v25 }
 0x10b   :  { %v774_v27 = vsel %vm146_vm2, %v766_v26, 0.0 }
 0x10c   :  { %775 = vadd.xlane.f32.xlu0 %v774_v27 }
 0x1d4   :  { %v226_v35 = vpop.f32.mrb[0].mxu1 }
 0x1d5   :  { %v230_v36 = vadd.f32 %v226_v35, %v156_v34  ;;  %v974_v37 = vpop.f32.mrb[1].mxu1  ;;  %v672_v34 = vadd.f32 %v1285_v18, %v671_v33 }
 0x1d7   :  { %1099 = vtanh.f32 %v230_v36 }
 0x1e1   :  { %v1100_v38 = vpop.eup %1099 }
 0x1e2   :  { %233 = vst.msk [vmem:[#allocation2 + $0x2] sm:$0x3] %vm146_vm2, %v1100_v38  ;;  %984 = vmatmul.mubr.msk.f32.vlgmr.msra.gmra.mrb[2].mxu0 %vm70_vm1, %v1100_v38 }
 0x1e3   :  { %1067 = vmatpush3.bf16.msra.mxu0 %v1242_v7  ;;  %1005 = vmatprep.mubr.msk.f32.mxu0 %vm1163_vm0, %v1164_v2 }
 0x1e4   :  { %1068 = vmatprep.subr.bf16.mxu0 %v1162_v1 }
 0x1e7   :  { %1070 = vmatpush3.bf16.msra.mxu0 %v1251_v10 }
 0x1e8   :  { %1077 = vmatprep.subr.bf16.mxu0 %v1162_v1 }
 0x1e9   :  { %v752_v39 = vld [vmem:[#allocation2 + $0x2] sm:$0x3] }
 0x1ea   :  { %v767_v40 = vmul.f32 %v1297_v24, %v752_v39 }
 0x1ec   :  { %v777_v41 = vsel %vm146_vm2, %v767_v40, 0.0 }
 0x1ed   :  { %778 = vadd.xlane.f32.xlu1 %v777_v41 }
 0x2b5   :  { %v312_v45 = vpop.f32.mrb[2].mxu0 }
 0x2b6   :  { %v316_v46 = vadd.f32 %v312_v45, %v242_v44  ;;  %v985_v47 = vpop.f32.mrb[3].mxu0 }
 0x2b8   :  { %1101 = vtanh.f32 %v316_v46 }
 0x2c2   :  { %v1102_v48 = vpop.eup %1101 }
 0x2c3   :  { %319 = vst.msk [vmem:[#allocation2 + $0x4] sm:$0x3] %vm146_vm2, %v1102_v48  ;;  %995 = vmatmul.mubr.msk.f32.vlgmr.msra.gmra.mrb[2].mxu1 %vm70_vm1, %v1102_v48 }
 0x2c4   :  { %1073 = vmatpush3.bf16.msra.mxu1 %v1242_v7  ;;  %1016 = vmatprep.mubr.msk.f32.mxu1 %vm1163_vm0, %v1164_v2 }
 0x2c5   :  { %1074 = vmatprep.subr.bf16.mxu1 %v1162_v1 }
 0x2c8   :  { %1076 = vmatpush3.bf16.msra.mxu1 %v1251_v10 }
 0x2c9   :  { %1083 = vmatprep.subr.bf16.mxu1 %v1162_v1 }
 0x2ca   :  { %v753_v49 = vld [vmem:[#allocation2 + $0x4] sm:$0x3] }
 0x2cb   :  { %v768_v50 = vmul.f32 %v1297_v24, %v753_v49 }
 0x2cd   :  { %v780_v51 = vsel %vm146_vm2, %v768_v50, 0.0 }
 0x2ce   :  { %781 = vadd.xlane.f32.xlu0 %v780_v51 }
 0x396   :  { %v398_v55 = vpop.f32.mrb[2].mxu1 }
 0x397   :  { %v402_v56 = vadd.f32 %v398_v55, %v328_v54  ;;  %v996_v57 = vpop.f32.mrb[3].mxu1 }
 0x399   :  { %1103 = vtanh.f32 %v402_v56 }
 0x3a3   :  { %v1104_v58 = vpop.eup %1103 }
 0x3a4   :  { %405 = vst.msk [vmem:[#allocation2 + $0x6] sm:$0x3] %vm146_vm2, %v1104_v58  ;;  %1006 = vmatmul.mubr.msk.f32.vlgmr.msra.gmra.mrb[4].mxu0 %vm70_vm1, %v1104_v58 }
 0x3a5   :  { %1079 = vmatpush3.bf16.msra.mxu0 %v1242_v7  ;;  %1027 = vmatprep.mubr.msk.f32.mxu0 %vm1163_vm0, %v1164_v2 }
 0x3a6   :  { %1080 = vmatprep.subr.bf16.mxu0 %v1162_v1 }
 0x3a9   :  { %1082 = vmatpush3.bf16.msra.mxu0 %v1251_v10 }
 0x3ab   :  { %v754_v59 = vld [vmem:[#allocation2 + $0x6] sm:$0x3] }
 0x3ac   :  { %v769_v60 = vmul.f32 %v1297_v24, %v754_v59 }
 0x3ae   :  { %v783_v61 = vsel %vm146_vm2, %v769_v60, 0.0 }
 0x3af   :  { %784 = vadd.xlane.f32.xlu0 %v783_v61 }
 0x477   :  { %v484_v3 = vpop.f32.mrb[4].mxu0 }
 0x478   :  { %v488_v4 = vadd.f32 %v484_v3, %v414_v0  ;;  %v1007_v5 = vpop.f32.mrb[5].mxu0 }
 0x47a   :  { %1105 = vtanh.f32 %v488_v4 }
 0x484   :  { %v1106_v6 = vpop.eup %1105 }
 0x485   :  { %491 = vst.msk [vmem:[#allocation2 + $0x8] sm:$0x3] %vm146_vm2, %v1106_v6  ;;  %1017 = vmatmul.mubr.msk.f32.vlgmr.msra.gmra.mrb[4].mxu1 %vm70_vm1, %v1106_v6 }
 0x486   :  { %1085 = vmatpush3.bf16.msra.mxu1 %v1242_v7  ;;  %1038 = vmatprep.mubr.msk.f32.mxu1 %vm1163_vm0, %v1164_v2 }
 0x487   :  { %1086 = vmatprep.subr.bf16.mxu1 %v1162_v1 }
 0x48a   :  { %1088 = vmatpush3.bf16.msra.mxu1 %v1251_v10 }
 0x48c   :  { %v755_v8 = vld [vmem:[#allocation2 + $0x8] sm:$0x3] }
 0x48d   :  { %v770_v9 = vmul.f32 %v1297_v24, %v755_v8 }
 0x48f   :  { %v786_v11 = vsel %vm146_vm2, %v770_v9, 0.0 }
 0x490   :  { %787 = vadd.xlane.f32.xlu1 %v786_v11 }
 0x558   :  { %v570_v16 = vpop.f32.mrb[4].mxu1 }
 0x559   :  { %v574_v7 = vadd.f32 %v570_v16, %v500_v14  ;;  %v1018_v17 = vpop.f32.mrb[5].mxu1 }
 0x55b   :  { %1107 = vtanh.f32 %v574_v7 }
 0x565   :  { %v1108_v2 = vpop.eup %1107 }
 0x566   :  { %577 = vst.msk [vmem:[#allocation2 + $0xa] sm:$0x3] %vm146_vm2, %v1108_v2  ;;  %1028 = vmatmul.mubr.msk.f32.vlgmr.msra.gmra.mrb[6].mxu0 %vm70_vm1, %v1108_v2 }
 0x56d   :  { %v756_v1 = vld [vmem:[#allocation2 + $0xa] sm:$0x3] }
 0x56e   :  { %v771_v10 = vmul.f32 %v1297_v24, %v756_v1 }
 0x570   :  { %v789_v19 = vsel %vm146_vm2, %v771_v10, 0.0 }
 0x571   :  { %790 = vadd.xlane.f32.xlu0 %v789_v19 }
 0x639   :  { %v656_v23 = vpop.f32.mrb[6].mxu0 }
 0x63a   :  { %v660_v25 = vadd.f32 %v656_v23, %v586_v22  ;;  %v1029_v26 = vpop.f32.mrb[7].mxu0 }
 0x63c   :  { %1109 = vtanh.f32 %v660_v25 }
 0x646   :  { %v1110_v27 = vpop.eup %1109 }
 0x647   :  { %663 = vst.msk [vmem:[#allocation2 + $0xc] sm:$0x3] %vm146_vm2, %v1110_v27  ;;  %1039 = vmatmul.mubr.msk.f32.vlgmr.msra.gmra.mrb[6].mxu1 %vm70_vm1, %v1110_v27 }
 0x64e   :  { %v757_v28 = vld [vmem:[#allocation2 + $0xc] sm:$0x3] }
 0x64f   :  { %v772_v29 = vmul.f32 %v1297_v24, %v757_v28 }
 0x651   :  { %v792_v30 = vsel %vm146_vm2, %v772_v29, 0.0 }
 0x652   :  { %793 = vadd.xlane.f32.xlu1 %v792_v30 }
 0x663   :  { %805 = vperm.xlu1 %1096, %v912_v31  }
 0x71a   :  { %v742_v35 = vpop.f32.mrb[6].mxu1 }
 0x71b   :  { %v746_v36 = vadd.f32 %v742_v35, %v672_v34  ;;  %v1040_v37 = vpop.f32.mrb[7].mxu1 }
 0x71d   :  { %1111 = vtanh.f32 %v746_v36 }
 0x727   :  { %v1112_v38 = vpop.eup %1111 }
 0x728   :  { %749 = vst.msk [vmem:[#allocation2 + $0xe] sm:$0x3] %vm146_vm2, %v1112_v38  ;;  %750 = vst.msk [vmem:[#allocation7] sm:$0x3] %vm146_vm2, %v1112_v38 }
 0x72f   :  { %v758_v39 = vld [vmem:[#allocation2 + $0xe] sm:$0x3] }
 0x730   :  { %v773_v40 = vmul.f32 %v1297_v24, %v758_v39 }
 0x732   :  { %v795_v41 = vsel %vm146_vm2, %v773_v40, 0.0 }
 0x733   :  { %796 = vadd.xlane.f32.xlu0 %v795_v41 }
 0x734   :  { %1146 = shalt.err (!%p1143_p12)
}
 0x735   :  { %s1147_s23 = scalar_lea.hbm %s1402_s8, 32 }
 0x736   :  { %p1148_p13 = scmp.ne.s32.totalorder %s1402_s8, %s1147_s23  ;;  %p1151_p0 = scmp.lt.u32.totalorder %s1147_s23, %s1402_s8 }
 0x738   :  { %p1153_p1 = pnand %p1151_p0, %p1148_p13 }
 0x73a   :  { %1156 = shalt.err (!%p1153_p1)
}
 0x73b   :  { %886 = dma.vmem_to_hbm [thread:$0]  %s884_s19, 32, %s1402_s8, [#allocation6]   ;;  %v779_v15 = vpop.xlane.xlu1 %778  ;;  %v824_v42 = vlaneseq  ;;  %v776_v46 = vpop.xlane.xlu0 %775  ;;  %vm858_vm3 = vcmask 1041409   ;;  %vm860_vm4 = vcmask 1042434   ;;  %vm862_vm5 = vcmask 1043459  }
 0x73c   :  { %vm864_vm6 = vcmask 1044484   ;;  %vm866_vm7 = vcmask 1045509   ;;  %vm868_vm8 = vcmask 1046534   ;;  %vm870_vm9 = vcmask 1047559  }
 0x73d   :  { %v825_v43 = vand.u32 127, %v824_v42  ;;  %v827_v44 = vshrl.u32 %v824_v42, 7  ;;  %vm873_vm10 = vcmask 15360  }
 0x73f   :  { %v788_v18 = vpop.xlane.xlu1 %787  ;;  %v828_v47 = vsub.s32 %v825_v43, %v827_v44  ;;  %v782_v50 = vpop.xlane.xlu0 %781 }
 0x743   :  { %v794_v24 = vpop.xlane.xlu1 %793  ;;  %v785_v54 = vpop.xlane.xlu0 %784 }
 0x747   :  { %v806_v45 = vpop.permute.xlu1 %805  ;;  %v791_v61 = vpop.xlane.xlu0 %790 }
 0x748   :  { %v808_v48 = vadd.f32 %v806_v45, %v776_v46  ;;  %v809_v49 = vadd.f32 %v806_v45, %v779_v15  ;;  %v810_v51 = vadd.f32 %v806_v45, %v782_v50  ;;  %v811_v56 = vadd.f32 %v806_v45, %v785_v54 }
 0x749   :  { %v812_v58 = vadd.f32 %v806_v45, %v788_v18  ;;  %v813_v62 = vadd.f32 %v806_v45, %v791_v61  ;;  %v814_v3 = vadd.f32 %v806_v45, %v794_v24 }
 0x74a   :  { %v829_v52 = vrot.slane %v808_v48, %v828_v47  ;;  %v833_v53 = vrot.slane %v809_v49, %v828_v47  ;;  %v837_v55 = vrot.slane %v810_v51, %v828_v47  ;;  %v841_v60 = vrot.slane %v811_v56, %v828_v47 }
 0x74b   :  { %v845_v0 = vrot.slane %v812_v58, %v828_v47  ;;  %v849_v5 = vrot.slane %v813_v62, %v828_v47  ;;  %v853_v11 = vrot.slane %v814_v3, %v828_v47 }
 0x74c   :  { %v859_v57 = vsel %vm858_vm3, %v833_v53, %v829_v52 }
 0x74d   :  { %v861_v59 = vsel %vm860_vm4, %v837_v55, %v859_v57 }
 0x74e   :  { %v863_v63 = vsel %vm862_vm5, %v841_v60, %v861_v59 }
 0x74f   :  { %v865_v4 = vsel %vm864_vm6, %v845_v0, %v863_v63 }
 0x750   :  { %v867_v8 = vsel %vm866_vm7, %v849_v5, %v865_v4 }
 0x751   :  { %v869_v13 = vsel %vm868_vm8, %v853_v11, %v867_v8 }
 0x7c0   :  { %v797_v6 = vpop.xlane.xlu0 %796 }
 0x7c1   :  { %v815_v9 = vadd.f32 %v806_v45, %v797_v6 }
 0x7c3   :  { %v857_v12 = vrot.slane %v815_v9, %v828_v47 }
 0x7c5   :  { %v871_v14 = vsel %vm870_vm9, %v857_v12, %v869_v13 }
 0x7c6   :  { %874 = vst.msk [vmem:[%s1401_s7] sm:$0xff] %vm873_vm10, %v871_v14 }
 0x7c7   :  { %1159 = dma.done.wait [#allocation6], 32  }
 0x7c8   :  { %1160 = vsyncadd [#allocation6], 4294967264 }
 0x7c9   :  { %892 = vsyncpa [#allocation5], 1 }
 0x7ca   :  { %893 = vsyncpa [#allocation6], 1 }

</bundles_post_ra>
